<compile_context>
chip_gen: v7x
topology: tpu7x:2x2x1
jax: 0.10.0
libtpu: 0.0.40
codegen_flags: <defaults>
</compile_context>

<pallas_src>
import jax
import jax.numpy as jnp
from jax.experimental import pallas as pl
from jax.experimental.pallas import tpu as pltpu

LANE = 128  # lane width (last-dim alignment)


def _round_up(n, m):
    return ((n + m - 1) // m) * m


def _cdiv(a, b):
    return (a + b - 1) // b


def _sublane_pack(dtype):
    # rows packed per 32-bit sublane: f32 -> 8, bf16 -> 16, int8/fp8 -> 32
    return 8 * max(1, 4 // jnp.dtype(dtype).itemsize)


def simplenet_kernel(x_ref, w1_ref, b1_ref, w2_ref, b2_ref, w3_ref, b3_ref, o_ref):
    """Fused 3-layer MLP on one (TM, in_p) batch tile.

    All three dots run on the MXU with f32 accumulation; bias adds and the
    epilogue stay in f32 (no bf16 VALU work — v5e has no bf16 VPU anyway).
    """
    x = x_ref[...]
    h1 = jnp.dot(x, w1_ref[...], preferred_element_type=jnp.float32) + b1_ref[...]
    h2 = jnp.dot(h1.astype(w2_ref.dtype), w2_ref[...],
                 preferred_element_type=jnp.float32) + b2_ref[...]
    h3 = jnp.dot(h2.astype(w3_ref.dtype), w3_ref[...],
                 preferred_element_type=jnp.float32) + b3_ref[...]
    o_ref[...] = h3.astype(o_ref.dtype)


def prepare_params(params, compute_dtype=jnp.float32):
    """One-time prep (do NOT call per forward):
    - transpose PyTorch-style (out, in) weights to (in, out),
    - zero-pad every feature dim to a multiple of 128 (lane-dense MXU tiles),
    - cast weights to the compute dtype (bf16 recommended on v5e/v6e/v7x),
    - keep biases in f32 as (1, out_p) rows.
    Zero padding preserves the exact forward semantics after slicing.
    """
    def prep_w(w):
        out_f, in_f = w.shape
        in_p, out_p = _round_up(in_f, LANE), _round_up(out_f, LANE)
        wt = jnp.zeros((in_p, out_p), compute_dtype)
        return wt.at[:in_f, :out_f].set(w.T.astype(compute_dtype))

    def prep_b(b):
        out_f = b.shape[0]
        out_p = _round_up(out_f, LANE)
        return jnp.zeros((1, out_p), jnp.float32).at[0, :out_f].set(b.astype(jnp.float32))

    return {
        "w1": prep_w(params["w1"]), "b1": prep_b(params["b1"]),
        "w2": prep_w(params["w2"]), "b2": prep_b(params["b2"]),
        "w3": prep_w(params["w3"]), "b3": prep_b(params["b3"]),
        "in_dim": int(params["w1"].shape[1]),
        "out_dim": int(params["w3"].shape[0]),
    }


def simplenet_forward(x, prepared, *, block_m=256, out_dtype=jnp.float32):
    """x: (B, in_dim). prepared: output of prepare_params()."""
    w1, b1 = prepared["w1"], prepared["b1"]
    w2, b2 = prepared["w2"], prepared["b2"]
    w3, b3 = prepared["w3"], prepared["b3"]
    in_dim, out_dim = prepared["in_dim"], prepared["out_dim"]

    B = x.shape[0]
    in_p, h1_p = w1.shape
    h2_p = w2.shape[1]
    outf_p = w3.shape[1]
    compute_dtype = w1.dtype
    pack = _sublane_pack(compute_dtype)

    # --- input prep: only the feature (K) dim ever needs true-zero padding ---------
    # (zero K-columns hit zero-padded weight rows -> exact). The batch remainder is
    # handled by the grid's ragged last tile: out-of-bounds output rows are dropped,
    # so no batch-dim pad (and no extra HBM pass over x) is needed.
    if in_dim == in_p and x.dtype == compute_dtype:
        x_p = x                                       # zero-copy fast path
    elif in_dim == in_p:
        x_p = x.astype(compute_dtype)
    else:
        x_p = jnp.zeros((B, in_p), compute_dtype).at[:, :in_dim].set(
            x.astype(compute_dtype))

    # --- batch tiling ---------------------------------------------------------------
    tm = min(block_m, _round_up(B, pack))
    grid_m = _cdiv(B, tm)
    if grid_m < 2 and B > 2 * pack:
        # Give v7x's two TensorCores >=2 tiles to split (no-op on 1-TC v5e/v6e).
        tm = _round_up(_cdiv(B, 2), pack)
        grid_m = _cdiv(B, tm)

    def resident(shape):
        # Weights / biases: same block every grid step -> VMEM-resident, and
        # single-buffered (the block index never changes, double-buffering is waste).
        return pl.BlockSpec(shape, lambda i: (0, 0), pipeline_mode=pl.Buffered(1))

    # --- cost / VMEM accounting -------------------------------------------------------
    eff_B = grid_m * tm
    flops = 2 * eff_B * (in_p * h1_p + h1_p * h2_p + h2_p * outf_p)
    weight_bytes = sum(int(a.size) * a.dtype.itemsize for a in (w1, b1, w2, b2, w3, b3))
    bytes_accessed = (int(x_p.size) * x_p.dtype.itemsize
                      + weight_bytes
                      + B * outf_p * jnp.dtype(out_dtype).itemsize)

    x_tile_bytes = tm * in_p * jnp.dtype(compute_dtype).itemsize
    o_tile_bytes = tm * outf_p * jnp.dtype(out_dtype).itemsize
    act_scratch = tm * max(h1_p, h2_p) * 4 * 2          # f32 intermediates headroom
    vmem_needed = weight_bytes + 2 * x_tile_bytes + 2 * o_tile_bytes + act_scratch
    vmem_limit = int(min(64 * 1024 * 1024, max(8 * 1024 * 1024, 2 * vmem_needed)))

    out_padded = pl.pallas_call(
        simplenet_kernel,
        out_shape=jax.ShapeDtypeStruct((B, outf_p), out_dtype),
        grid=(grid_m,),
        in_specs=[
            pl.BlockSpec((tm, in_p), lambda i: (i, 0)),        # batch-tiled input
            resident((in_p, h1_p)), resident((1, h1_p)),       # layer1 W, b
            resident((h1_p, h2_p)), resident((1, h2_p)),       # layer2 W, b
            resident((h2_p, outf_p)), resident((1, outf_p)),   # layer3 W, b
        ],
        out_specs=pl.BlockSpec((tm, outf_p), lambda i: (i, 0)),
        compiler_params=pltpu.CompilerParams(
            dimension_semantics=("parallel",),
            vmem_limit_bytes=vmem_limit),
        cost_estimate=pl.CostEstimate(
            flops=flops, transcendentals=0, bytes_accessed=bytes_accessed),
    )(x_p, w1, b1, w2, b2, w3, b3)

    # Drop zero-padded feature columns (batch dim was never padded).
    return out_padded[:, :out_dim]


def init_params(key, in_dim, n_hidden_1, n_hidden_2, out_dim):
    """Deterministic init mimicking PyTorch nn.Linear default:
    U(-1/sqrt(fan_in), 1/sqrt(fan_in)) for both weight and bias."""
    keys = jax.random.split(key, 6)

    def linear(kw, kb, fan_in, fan_out):
        bound = 1.0 / jnp.sqrt(jnp.float32(fan_in))
        w = jax.random.uniform(kw, (fan_out, fan_in), jnp.float32, -bound, bound)
        b = jax.random.uniform(kb, (fan_out,), jnp.float32, -bound, bound)
        return w, b

    w1, b1 = linear(keys[0], keys[1], in_dim, n_hidden_1)
    w2, b2 = linear(keys[2], keys[3], n_hidden_1, n_hidden_2)
    w3, b3 = linear(keys[4], keys[5], n_hidden_2, out_dim)
    return {"w1": w1, "b1": b1, "w2": w2, "b2": b2, "w3": w3, "b3": b3}


if __name__ == "__main__":
    # Small shapes consistent with the module's forward (a plain MLP on 2D input).
    batch, in_dim, n_hidden_1, n_hidden_2, out_dim = 16, 32, 64, 48, 16

    key = jax.random.PRNGKey(0)
    k_x, k_p = jax.random.split(key)
    x = jax.random.normal(k_x, (batch, in_dim), jnp.float32)
    params = init_params(k_p, in_dim, n_hidden_1, n_hidden_2, out_dim)

    # Reference in plain JAX (same semantics as the PyTorch forward).
    ref = x
    for wk, bk in (("w1", "b1"), ("w2", "b2"), ("w3", "b3")):
        ref = ref @ params[wk].T + params[bk]

    # 1) f32 compute path: exact forward semantics.
    prepared_f32 = prepare_params(params, compute_dtype=jnp.float32)
    out_f32 = jax.block_until_ready(simplenet_forward(x, prepared_f32))
    assert out_f32.shape == (batch, out_dim)
    assert jnp.allclose(out_f32, ref, atol=1e-4, rtol=1e-4)

    # 2) bf16 compute path (recommended on v5e/v6e/v7x): bf16 MXU, f32 accumulation,
    #    f32 bias/epilogue. Checked with a correspondingly looser tolerance.
    prepared_bf16 = prepare_params(params, compute_dtype=jnp.bfloat16)
    out_bf16 = jax.block_until_ready(simplenet_forward(x, prepared_bf16))
    assert out_bf16.shape == (batch, out_dim)
    assert jnp.allclose(out_bf16, ref, atol=5e-2, rtol=5e-2)

    print("KERNEL_OK")
</pallas_src>

<mosaic_0001>
module attributes {stable_mosaic.version = 11 : i64} {
  func.func @simplenet_kernel(%arg0: i32, %arg1: memref<16x128xf32, #tpu.memory_space<vmem>>, %arg2: memref<128x128xf32, #tpu.memory_space<vmem>>, %arg3: memref<1x128xf32, #tpu.memory_space<vmem>>, %arg4: memref<128x128xf32, #tpu.memory_space<vmem>>, %arg5: memref<1x128xf32, #tpu.memory_space<vmem>>, %arg6: memref<128x128xf32, #tpu.memory_space<vmem>>, %arg7: memref<1x128xf32, #tpu.memory_space<vmem>>, %arg8: memref<16x128xf32, #tpu.memory_space<vmem>>) attributes {dimension_semantics = [#tpu.dimension_semantics<parallel>], iteration_bounds = array<i64: 1>, scalar_prefetch = 0 : i64, scratch_operands = 0 : i64, tpu.core_type = #tpu.core_type<tc>, window_params = [{transform_indices = @transform_0, window_bounds = array<i64: 16, 128>}, {pipeline_mode = #tpu.pipeline_mode<synchronous>, transform_indices = @transform_1, window_bounds = array<i64: 128, 128>}, {pipeline_mode = #tpu.pipeline_mode<synchronous>, transform_indices = @transform_2, window_bounds = array<i64: 1, 128>}, {pipeline_mode = #tpu.pipeline_mode<synchronous>, transform_indices = @transform_3, window_bounds = array<i64: 128, 128>}, {pipeline_mode = #tpu.pipeline_mode<synchronous>, transform_indices = @transform_4, window_bounds = array<i64: 1, 128>}, {pipeline_mode = #tpu.pipeline_mode<synchronous>, transform_indices = @transform_5, window_bounds = array<i64: 128, 128>}, {pipeline_mode = #tpu.pipeline_mode<synchronous>, transform_indices = @transform_6, window_bounds = array<i64: 1, 128>}, {transform_indices = @transform_7, window_bounds = array<i64: 16, 128>}]} {
    %c0 = arith.constant 0 : index
    %c0_0 = arith.constant 0 : index
    %0 = vector.load %arg1[%c0, %c0_0] : memref<16x128xf32, #tpu.memory_space<vmem>>, vector<16x128xf32>
    %c0_1 = arith.constant 0 : index
    %c0_2 = arith.constant 0 : index
    %1 = vector.load %arg2[%c0_1, %c0_2] : memref<128x128xf32, #tpu.memory_space<vmem>>, vector<128x128xf32>
    %cst = arith.constant dense<0.000000e+00> : vector<16x128xf32>
    %2 = tpu.matmul %0, %1, %cst {dimension_numbers = #tpu.dot_dimension_numbers<[1], [0], [0], [1], [0, 0, 1, 1], [], []>} : vector<16x128xf32>, vector<128x128xf32>, vector<16x128xf32> -> vector<16x128xf32>
    %c0_3 = arith.constant 0 : index
    %c0_4 = arith.constant 0 : index
    %3 = vector.load %arg3[%c0_3, %c0_4] : memref<1x128xf32, #tpu.memory_space<vmem>>, vector<1x128xf32>
    %4 = vector.broadcast %3 : vector<1x128xf32> to vector<16x128xf32>
    %5 = arith.addf %2, %4 : vector<16x128xf32>
    %c0_5 = arith.constant 0 : index
    %c0_6 = arith.constant 0 : index
    %6 = vector.load %arg4[%c0_5, %c0_6] : memref<128x128xf32, #tpu.memory_space<vmem>>, vector<128x128xf32>
    %cst_7 = arith.constant dense<0.000000e+00> : vector<16x128xf32>
    %7 = tpu.matmul %5, %6, %cst_7 {dimension_numbers = #tpu.dot_dimension_numbers<[1], [0], [0], [1], [0, 0, 1, 1], [], []>} : vector<16x128xf32>, vector<128x128xf32>, vector<16x128xf32> -> vector<16x128xf32>
    %c0_8 = arith.constant 0 : index
    %c0_9 = arith.constant 0 : index
    %8 = vector.load %arg5[%c0_8, %c0_9] : memref<1x128xf32, #tpu.memory_space<vmem>>, vector<1x128xf32>
    %9 = vector.broadcast %8 : vector<1x128xf32> to vector<16x128xf32>
    %10 = arith.addf %7, %9 : vector<16x128xf32>
    %c0_10 = arith.constant 0 : index
    %c0_11 = arith.constant 0 : index
    %11 = vector.load %arg6[%c0_10, %c0_11] : memref<128x128xf32, #tpu.memory_space<vmem>>, vector<128x128xf32>
    %cst_12 = arith.constant dense<0.000000e+00> : vector<16x128xf32>
    %12 = tpu.matmul %10, %11, %cst_12 {dimension_numbers = #tpu.dot_dimension_numbers<[1], [0], [0], [1], [0, 0, 1, 1], [], []>} : vector<16x128xf32>, vector<128x128xf32>, vector<16x128xf32> -> vector<16x128xf32>
    %c0_13 = arith.constant 0 : index
    %c0_14 = arith.constant 0 : index
    %13 = vector.load %arg7[%c0_13, %c0_14] : memref<1x128xf32, #tpu.memory_space<vmem>>, vector<1x128xf32>
    %14 = vector.broadcast %13 : vector<1x128xf32> to vector<16x128xf32>
    %15 = arith.addf %12, %14 : vector<16x128xf32>
    %c0_15 = arith.constant 0 : index
    %c0_16 = arith.constant 0 : index
    %16 = vector.load %arg8[%c0_15, %c0_16] : memref<16x128xf32, #tpu.memory_space<vmem>>, vector<16x128xf32>
    tpu.vector_store %arg8[%c0_15, %c0_16], %15 {strides = array<i32>} : memref<16x128xf32, #tpu.memory_space<vmem>>, vector<16x128xf32>,
    return
  }
  func.func @transform_0(%arg0: i32) -> (i32, i32) {
    %c0_i32 = arith.constant 0 : i32
    %c0_i32_0 = arith.constant 0 : i32
    return %arg0, %c0_i32 : i32, i32
  }
  func.func @transform_1(%arg0: i32) -> (i32, i32) {
    %c0_i32 = arith.constant 0 : i32
    %c0_i32_0 = arith.constant 0 : i32
    %c0_i32_1 = arith.constant 0 : i32
    return %c0_i32, %c0_i32_0 : i32, i32
  }
  func.func @transform_2(%arg0: i32) -> (i32, i32) {
    %c0_i32 = arith.constant 0 : i32
    %c0_i32_0 = arith.constant 0 : i32
    %c0_i32_1 = arith.constant 0 : i32
    return %c0_i32, %c0_i32_0 : i32, i32
  }
  func.func @transform_3(%arg0: i32) -> (i32, i32) {
    %c0_i32 = arith.constant 0 : i32
    %c0_i32_0 = arith.constant 0 : i32
    %c0_i32_1 = arith.constant 0 : i32
    return %c0_i32, %c0_i32_0 : i32, i32
  }
  func.func @transform_4(%arg0: i32) -> (i32, i32) {
    %c0_i32 = arith.constant 0 : i32
    %c0_i32_0 = arith.constant 0 : i32
    %c0_i32_1 = arith.constant 0 : i32
    return %c0_i32, %c0_i32_0 : i32, i32
  }
  func.func @transform_5(%arg0: i32) -> (i32, i32) {
    %c0_i32 = arith.constant 0 : i32
    %c0_i32_0 = arith.constant 0 : i32
    %c0_i32_1 = arith.constant 0 : i32
    return %c0_i32, %c0_i32_0 : i32, i32
  }
  func.func @transform_6(%arg0: i32) -> (i32, i32) {
    %c0_i32 = arith.constant 0 : i32
    %c0_i32_0 = arith.constant 0 : i32
    %c0_i32_1 = arith.constant 0 : i32
    return %c0_i32, %c0_i32_0 : i32, i32
  }
  func.func @transform_7(%arg0: i32) -> (i32, i32) {
    %c0_i32 = arith.constant 0 : i32
    %c0_i32_0 = arith.constant 0 : i32
    return %arg0, %c0_i32 : i32, i32
  }
}

</mosaic_0001>

<bundles_post_ra>
// kernel: tpu_custom_call.1
= control target key start
LH: loop header
LB: loop body
LE: loop exit
PB: predicated region body
PF: predicated region fallthrough
CT: control target
= control target key end

     0   :  { %12 = vsyncpa [#allocation3], 0  ;;  %s927_s0 = inlined_call_operand.hbm [shape: f32[16,128], index: 0, kind: input, shape index: {}]   ;;  %s928_s1 = inlined_call_operand.hbm [shape: f32[128,128], index: 1, kind: input, shape index: {}]   ;;  %s929_s2 = inlined_call_operand.vmem [shape: f32[1,128], index: 2, kind: input, shape index: {}]   ;;  %s930_s3 = inlined_call_operand.hbm [shape: f32[128,128], index: 3, kind: input, shape index: {}]   ;;  %s931_s4 = inlined_call_operand.vmem [shape: f32[1,128], index: 4, kind: input, shape index: {}]   ;;  %s932_s5 = inlined_call_operand.hbm [shape: f32[128,128], index: 5, kind: input, shape index: {}]   ;;  %s933_s6 = inlined_call_operand.vmem [shape: f32[1,128], index: 6, kind: input, shape index: {}]   ;;  %s934_s7 = inlined_call_operand.hbm [shape: f32[16,128], index: 7, kind: output, shape index: {}]  }
   0x1   :  { %13 = vsyncpa [#allocation6], 0 }
   0x2   :  { %14 = vsyncpa [#allocation9], 0 }
   0x3   :  { %15 = vsyncpa [#allocation4], 0  ;;  %s782_s24 = smov [#allocation5]   ;;  %s783_s26 = smov [#allocation2]  }
   0x4   :  { %s33_s25 = sshll.u32 %s782_s24, 4  ;;  %s21_s27 = sshll.u32 %s783_s26, 4  ;;  %s34_s25 = int_to_ptr.vmem [resolvable:$true] %s33_s25  ;;  %s829_s27 = int_to_ptr.vmem [resolvable:$true] %s21_s27 }
   0x5   :  { %s664_s30 = scalar_lea.hbm %s928_s1, 2048 }
   0x6   :  { %p665_p0 = scmp.ne.s32.totalorder %s928_s1, %s664_s30  ;;  %p668_p1 = scmp.lt.u32.totalorder %s664_s30, %s928_s1 }
   0x8   :  { %p670_p2 = pnand %p668_p1, %p665_p0 }
   0xa   :  { %673 = shalt.err (!%p670_p2)
}
   0xb   :  { %s674_s12 = scalar_lea.vmem %s34_s25, 2048  ;;  %p679_p4 = scmp.lt.s32.totalorder %s34_s25, %s34_s25 }
   0xc   :  { %p675_p3 = scmp.ne.s32.totalorder %s34_s25, %s674_s12  ;;  %p680_p5 = scmp.lt.s32.totalorder %s674_s12, %s674_s12 }
   0xe   :  { %p681_p6 = por %p680_p5, %p679_p4 }
  0x10   :  { %p682_p7 = pnand %p681_p6, %p675_p3 }
  0x12   :  { %685 = shalt.err (!%p682_p7)
}
  0x13   :  { %s784_s13 = smov 128   ;;  %s785_s14 = smov 8  }
  0x14   :  { %39 = dma.hbm_to_vmem [thread:$0]  %s928_s1, 2048, %s34_s25, [#allocation6], %s784_s13, %s784_s13, %s785_s14  }
  0x15   :  { %s686_s19 = scalar_lea.hbm %s927_s0, 256 }
  0x16   :  { %p687_p8 = scmp.ne.s32.totalorder %s927_s0, %s686_s19  ;;  %p690_p9 = scmp.lt.u32.totalorder %s686_s19, %s927_s0 }
  0x18   :  { %p692_p10 = pnand %p690_p9, %p687_p8 }
  0x1a   :  { %695 = shalt.err (!%p692_p10)
}
  0x1b   :  { %s696_s24 = scalar_lea.vmem %s829_s27, 256  ;;  %p701_p12 = scmp.lt.s32.totalorder %s829_s27, %s829_s27 }
  0x1c   :  { %p697_p11 = scmp.ne.s32.totalorder %s829_s27, %s696_s24  ;;  %p702_p13 = scmp.lt.s32.totalorder %s696_s24, %s696_s24 }
  0x1e   :  { %p703_p0 = por %p702_p13, %p701_p12 }
  0x20   :  { %p704_p1 = pnand %p703_p0, %p697_p11 }
  0x22   :  { %707 = shalt.err (!%p704_p1)
}
  0x23   :  { %27 = dma.hbm_to_vmem [thread:$0]  %s927_s0, 256, %s829_s27, [#allocation3], %s784_s13, %s784_s13, %s785_s14  }
  0x24   :  { %s786_s26 = smov [#allocation7]   ;;  %s787_s29 = smov [#allocation8]  }
  0x25   :  { %s47_s28 = sshll.u32 %s786_s26, 4  ;;  %s61_s30 = sshll.u32 %s787_s29, 4  ;;  %s48_s28 = int_to_ptr.vmem [resolvable:$true] %s47_s28  ;;  %s866_s30 = int_to_ptr.vmem [resolvable:$true] %s61_s30 }
  0x26   :  { %s708_s10 = scalar_lea.hbm %s930_s3, 2048 }
  0x27   :  { %p709_p2 = scmp.ne.s32.totalorder %s930_s3, %s708_s10  ;;  %p712_p3 = scmp.lt.u32.totalorder %s708_s10, %s930_s3 }
  0x29   :  { %p714_p4 = pnand %p712_p3, %p709_p2 }
  0x2b   :  { %717 = shalt.err (!%p714_p4)
}
  0x2c   :  { %s718_s0 = scalar_lea.vmem %s48_s28, 2048  ;;  %p723_p6 = scmp.lt.s32.totalorder %s48_s28, %s48_s28 }
  0x2d   :  { %p719_p5 = scmp.ne.s32.totalorder %s48_s28, %s718_s0  ;;  %p724_p7 = scmp.lt.s32.totalorder %s718_s0, %s718_s0 }
  0x2f   :  { %p725_p8 = por %p724_p7, %p723_p6 }
  0x31   :  { %p726_p9 = pnand %p725_p8, %p719_p5 }
  0x33   :  { %729 = shalt.err (!%p726_p9)
}
  0x34   :  { %53 = dma.hbm_to_vmem [thread:$0]  %s930_s3, 2048, %s48_s28, [#allocation6], %s784_s13, %s784_s13, %s785_s14  }
  0x35   :  { %s730_s20 = scalar_lea.hbm %s932_s5, 2048 }
  0x36   :  { %p731_p10 = scmp.ne.s32.totalorder %s932_s5, %s730_s20  ;;  %p734_p11 = scmp.lt.u32.totalorder %s730_s20, %s932_s5 }
  0x38   :  { %p736_p12 = pnand %p734_p11, %p731_p10 }
  0x3a   :  { %739 = shalt.err (!%p736_p12)
}
  0x3b   :  { %s740_s1 = scalar_lea.vmem %s866_s30, 2048  ;;  %p745_p0 = scmp.lt.s32.totalorder %s866_s30, %s866_s30 }
  0x3c   :  { %p741_p13 = scmp.ne.s32.totalorder %s866_s30, %s740_s1  ;;  %p746_p1 = scmp.lt.s32.totalorder %s740_s1, %s740_s1 }
  0x3e   :  { %p747_p2 = por %p746_p1, %p745_p0 }
  0x40   :  { %p748_p3 = pnand %p747_p2, %p741_p13 }
  0x42   :  { %751 = shalt.err (!%p748_p3)
}
  0x43   :  { %67 = dma.hbm_to_vmem [thread:$0]  %s932_s5, 2048, %s866_s30, [#allocation9], %s784_s13, %s784_s13, %s785_s14  }
  0x44   :  { %774 = dma.done.wait [#allocation3], 256  }
  0x45   :  { %775 = vsyncadd [#allocation3], 4294967040 }
  0x46   :  { %776 = dma.done.wait [#allocation6], 4096  }
  0x47   :  { %777 = vsyncadd [#allocation6], 4294963200 }
  0x48   :  { %778 = dma.done.wait [#allocation9], 2048  }
  0x49   :  { %779 = vsyncadd [#allocation9], 4294965248  ;;  %v84_v0 = vld [vmem:[#allocation5] sm:$0xff]  ;;  %v85_v1 = vld [vmem:[#allocation5 + $0x8] sm:$0xff]  ;;  %s788_s8 = smov [#allocation10]  }
  0x4a   :  { %v86_v2 = vld [vmem:[#allocation5 + $0x10] sm:$0xff]  ;;  %v561_v3 = vpack.c.bf16 %v85_v1, %v84_v0  ;;  %v87_v4 = vld [vmem:[#allocation5 + $0x18] sm:$0xff]  ;;  %v88_v6 = vld [vmem:[#allocation5 + $0x20] sm:$0xff]  ;;  %s385_s9 = sshll.u32 %s788_s8, 4  ;;  %s386_s9 = int_to_ptr.vmem [resolvable:$true] %s385_s9 }
  0x4b   :  { %v565_v5 = vpack.c.bf16 %v87_v4, %v86_v2  ;;  %v89_v7 = vld [vmem:[#allocation5 + $0x28] sm:$0xff]  ;;  %v90_v9 = vld [vmem:[#allocation5 + $0x30] sm:$0xff]  ;;  %v91_v10 = vld [vmem:[#allocation5 + $0x38] sm:$0xff]  ;;  %p757_p5 = scmp.lt.s32.totalorder %s386_s9, %s386_s9 }
  0x4c   :  { %562 = vmatprep.subr.bf16.mxu0 %v561_v3  ;;  %v569_v8 = vpack.c.bf16 %v89_v7, %v88_v6  ;;  %v82_v11 = vld [vmem:[#allocation2] sm:$0xff]  ;;  %v182_v12 = vld [vmem:[#allocation7] sm:$0xff]  ;;  %v183_v13 = vld [vmem:[#allocation7 + $0x8] sm:$0xff]  ;;  %v573_v20 = vpack.c.bf16 %v91_v10, %v90_v9 }
  0x4d   :  { %564 = vmatpush3.bf16.msra.mxu0 %v561_v3  ;;  %488 = vmatprep.mubr.f32.mxu0 %v82_v11  ;;  %v184_v14 = vld [vmem:[#allocation7 + $0x10] sm:$0xff]  ;;  %v593_v15 = vpack.c.bf16 %v183_v13, %v182_v12  ;;  %v185_v16 = vld [vmem:[#allocation7 + $0x18] sm:$0xff]  ;;  %v186_v18 = vld [vmem:[#allocation7 + $0x20] sm:$0xff] }
  0x4e   :  { %566 = vmatprep.subr.bf16.mxu0 %v565_v5  ;;  %v597_v17 = vpack.c.bf16 %v185_v16, %v184_v14  ;;  %v187_v19 = vld [vmem:[#allocation7 + $0x28] sm:$0xff]  ;;  %v92_v21 = vld [vmem:[#allocation5 + $0x40] sm:$0xff]  ;;  %v188_v24 = vld [vmem:[#allocation7 + $0x30] sm:$0xff] }
  0x4f   :  { %594 = vmatprep.subr.bf16.mxu1 %v593_v15  ;;  %v93_v22 = vld [vmem:[#allocation5 + $0x48] sm:$0xff]  ;;  %v601_v23 = vpack.c.bf16 %v187_v19, %v186_v18  ;;  %v189_v25 = vld [vmem:[#allocation7 + $0x38] sm:$0xff]  ;;  %v94_v27 = vld [vmem:[#allocation5 + $0x50] sm:$0xff] }
  0x50   :  { %596 = vmatpush3.bf16.msra.mxu1 %v593_v15  ;;  %v577_v26 = vpack.c.bf16 %v93_v22, %v92_v21  ;;  %v95_v28 = vld [vmem:[#allocation5 + $0x58] sm:$0xff]  ;;  %v605_v29 = vpack.c.bf16 %v189_v25, %v188_v24  ;;  %v190_v30 = vld [vmem:[#allocation7 + $0x40] sm:$0xff]  ;;  %v191_v31 = vld [vmem:[#allocation7 + $0x48] sm:$0xff] }
  0x51   :  { %568 = vmatpush3.bf16.msra.mxu0 %v565_v5  ;;  %598 = vmatprep.subr.bf16.mxu1 %v597_v17  ;;  %v581_v32 = vpack.c.bf16 %v95_v28, %v94_v27  ;;  %v96_v33 = vld [vmem:[#allocation5 + $0x60] sm:$0xff]  ;;  %v97_v34 = vld [vmem:[#allocation5 + $0x68] sm:$0xff]  ;;  %v609_v35 = vpack.c.bf16 %v191_v31, %v190_v30  ;;  %v192_v36 = vld [vmem:[#allocation7 + $0x50] sm:$0xff] }
  0x52   :  { %570 = vmatprep.subr.bf16.mxu0 %v569_v8  ;;  %v193_v37 = vld [vmem:[#allocation7 + $0x58] sm:$0xff]  ;;  %v585_v38 = vpack.c.bf16 %v97_v34, %v96_v33  ;;  %v98_v39 = vld [vmem:[#allocation5 + $0x70] sm:$0xff]  ;;  %v194_v42 = vld [vmem:[#allocation7 + $0x60] sm:$0xff] }
  0x53   :  { %v99_v40 = vld [vmem:[#allocation5 + $0x78] sm:$0xff]  ;;  %v613_v41 = vpack.c.bf16 %v193_v37, %v192_v36  ;;  %v195_v43 = vld [vmem:[#allocation7 + $0x68] sm:$0xff]  ;;  %v196_v47 = vld [vmem:[#allocation7 + $0x70] sm:$0xff] }
  0x54   :  { %600 = vmatpush3.bf16.msra.mxu1 %v597_v17  ;;  %v589_v44 = vpack.c.bf16 %v99_v40, %v98_v39  ;;  %v617_v45 = vpack.c.bf16 %v195_v43, %v194_v42  ;;  %v83_v46 = vld [vmem:[#allocation2 + $0x8] sm:$0xff]  ;;  %v280_v50 = vld [vmem:[#allocation8] sm:$0xff]  ;;  %v281_v51 = vld [vmem:[#allocation8 + $0x8] sm:$0xff] }
  0x55   :  { %572 = vmatpush3.bf16.msra.mxu0 %v569_v8  ;;  %602 = vmatprep.subr.bf16.mxu1 %v601_v23  ;;  %v197_v48 = vld [vmem:[#allocation7 + $0x78] sm:$0xff]  ;;  %v282_v52 = vld [vmem:[#allocation8 + $0x10] sm:$0xff]  ;;  %v625_v53 = vpack.c.bf16 %v281_v51, %v280_v50  ;;  %v284_v56 = vld [vmem:[#allocation8 + $0x20] sm:$0xff] }
  0x56   :  { %574 = vmatprep.subr.bf16.mxu0 %v573_v20  ;;  %v621_v49 = vpack.c.bf16 %v197_v48, %v196_v47  ;;  %v283_v54 = vld [vmem:[#allocation8 + $0x18] sm:$0xff]  ;;  %v285_v57 = vld [vmem:[#allocation8 + $0x28] sm:$0xff]  ;;  %v286_v59 = vld [vmem:[#allocation8 + $0x30] sm:$0xff] }
  0x57   :  { %v629_v55 = vpack.c.bf16 %v283_v54, %v282_v52  ;;  %v633_v58 = vpack.c.bf16 %v285_v57, %v284_v56  ;;  %v287_v60 = vld [vmem:[#allocation8 + $0x38] sm:$0xff]  ;;  %v288_v62 = vld [vmem:[#allocation8 + $0x40] sm:$0xff]  ;;  %v289_v63 = vld [vmem:[#allocation8 + $0x48] sm:$0xff] }
  0x58   :  { %604 = vmatpush3.bf16.msra.mxu1 %v601_v23  ;;  %v637_v61 = vpack.c.bf16 %v287_v60, %v286_v59  ;;  %v641_v0 = vpack.c.bf16 %v289_v63, %v288_v62  ;;  %v290_v1 = vld [vmem:[#allocation8 + $0x50] sm:$0xff]  ;;  %v291_v2 = vld [vmem:[#allocation8 + $0x58] sm:$0xff]  ;;  %v292_v4 = vld [vmem:[#allocation8 + $0x60] sm:$0xff] }
  0x59   :  { %576 = vmatpush3.bf16.msra.mxu0 %v573_v20  ;;  %606 = vmatprep.subr.bf16.mxu1 %v605_v29  ;;  %v645_v3 = vpack.c.bf16 %v291_v2, %v290_v1  ;;  %v293_v5 = vld [vmem:[#allocation8 + $0x68] sm:$0xff]  ;;  %v399_v7 = vld [vmem:[%s929_s2] ss:$0 sm:$0xff]  ;;  %v295_v13 = vld [vmem:[#allocation8 + $0x78] sm:$0xff] }
  0x5a   :  { %578 = vmatprep.subr.bf16.mxu0 %v577_v26  ;;  %v649_v6 = vpack.c.bf16 %v293_v5, %v292_v4  ;;  %v294_v12 = vld [vmem:[#allocation8 + $0x70] sm:$0xff] }
  0x5b   :  { %v653_v14 = vpack.c.bf16 %v295_v13, %v294_v12  ;;  %v400_v15 = vld [vmem:[%s931_s4] ss:$0 sm:$0xff]  ;;  %s752_s4 = scalar_lea.vmem %s386_s9, 256 }
  0x5c   :  { %608 = vmatpush3.bf16.msra.mxu1 %v605_v29  ;;  %v401_v20 = vld [vmem:[%s933_s6] ss:$0 sm:$0xff]  ;;  %p753_p4 = scmp.ne.s32.totalorder %s386_s9, %s752_s4  ;;  %p758_p6 = scmp.lt.s32.totalorder %s752_s4, %s752_s4 }
  0x5d   :  { %580 = vmatpush3.bf16.msra.mxu0 %v577_v26  ;;  %610 = vmatprep.subr.bf16.mxu1 %v609_v35 }
  0x5e   :  { %582 = vmatprep.subr.bf16.mxu0 %v581_v32  ;;  %p759_p7 = por %p758_p6, %p757_p5 }
  0x60   :  { %612 = vmatpush3.bf16.msra.mxu1 %v609_v35  ;;  %p760_p8 = pnand %p759_p7, %p753_p4 }
  0x61   :  { %584 = vmatpush3.bf16.msra.mxu0 %v581_v32  ;;  %614 = vmatprep.subr.bf16.mxu1 %v613_v41 }
  0x62   :  { %586 = vmatprep.subr.bf16.mxu0 %v585_v38 }
  0x64   :  { %616 = vmatpush3.bf16.msra.mxu1 %v613_v41 }
  0x65   :  { %588 = vmatpush3.bf16.msra.mxu0 %v585_v38  ;;  %618 = vmatprep.subr.bf16.mxu1 %v617_v45 }
  0x66   :  { %590 = vmatprep.subr.bf16.mxu0 %v589_v44 }
  0x68   :  { %620 = vmatpush3.bf16.msra.mxu1 %v617_v45 }
  0x69   :  { %592 = vmatpush3.bf16.msra.mxu0 %v589_v44  ;;  %622 = vmatprep.subr.bf16.mxu1 %v621_v49 }
  0x6a   :  { %626 = vmatprep.subr.bf16.mxu0 %v625_v53 }
  0x6c   :  { %489 = vmatmul.mubr.f32.vlgmr.msra.gmra.mrb[0].mxu0 %v83_v46  ;;  %624 = vmatpush3.bf16.msra.mxu1 %v621_v49 }
  0x6d   :  { %628 = vmatpush3.bf16.msra.mxu0 %v625_v53 }
  0x6e   :  { %630 = vmatprep.subr.bf16.mxu0 %v629_v55 }
  0x71   :  { %632 = vmatpush3.bf16.msra.mxu0 %v629_v55 }
  0x72   :  { %634 = vmatprep.subr.bf16.mxu0 %v633_v58 }
  0x75   :  { %636 = vmatpush3.bf16.msra.mxu0 %v633_v58 }
  0x76   :  { %638 = vmatprep.subr.bf16.mxu0 %v637_v61 }
  0x79   :  { %640 = vmatpush3.bf16.msra.mxu0 %v637_v61 }
  0x7a   :  { %642 = vmatprep.subr.bf16.mxu0 %v641_v0 }
  0x7d   :  { %644 = vmatpush3.bf16.msra.mxu0 %v641_v0 }
  0x7e   :  { %646 = vmatprep.subr.bf16.mxu0 %v645_v3 }
  0x81   :  { %648 = vmatpush3.bf16.msra.mxu0 %v645_v3 }
  0x82   :  { %650 = vmatprep.subr.bf16.mxu0 %v649_v6 }
  0x85   :  { %652 = vmatpush3.bf16.msra.mxu0 %v649_v6 }
  0x86   :  { %654 = vmatprep.subr.bf16.mxu0 %v653_v14 }
  0x89   :  { %656 = vmatpush3.bf16.msra.mxu0 %v653_v14 }
 0x13f   :  { %v490_v8 = vpop.f32.mrb[0].mxu0 }
 0x140   :  { %v173_v9 = vpop.f32.mrb[1].mxu0  ;;  %v179_v11 = vadd.f32 %v490_v8, %v399_v7 }
 0x141   :  { %v174_v10 = vadd.f32 %v399_v7, %v173_v9 }
 0x143   :  { %523 = vmatprep.mubr.f32.mxu1 %v174_v10 }
 0x144   :  { %524 = vmatmul.mubr.f32.vlgmr.msra.gmra.mrb[0].mxu1 %v179_v11 }
 0x217   :  { %v525_v16 = vpop.f32.mrb[0].mxu1 }
 0x218   :  { %v271_v17 = vpop.f32.mrb[1].mxu1  ;;  %v277_v19 = vadd.f32 %v525_v16, %v400_v15 }
 0x219   :  { %v272_v18 = vadd.f32 %v400_v15, %v271_v17 }
 0x21b   :  { %558 = vmatprep.mubr.f32.mxu0 %v272_v18 }
 0x21c   :  { %559 = vmatmul.mubr.f32.vlgmr.msra.gmra.mrb[2].mxu0 %v277_v19 }
 0x2ef   :  { %v560_v21 = vpop.f32.mrb[2].mxu0 }
 0x2f0   :  { %v375_v22 = vadd.f32 %v560_v21, %v401_v20  ;;  %v369_v23 = vpop.f32.mrb[3].mxu0 }
 0x2f1   :  { %v370_v24 = vadd.f32 %v401_v20, %v369_v23 }
 0x2f2   :  { %379 = vst [vmem:[#allocation10 + $0x8] sm:$0xff] %v375_v22 }
 0x2f3   :  { %378 = vst [vmem:[#allocation10] sm:$0xff] %v370_v24 }
 0x2f4   :  { %763 = shalt.err (!%p760_p8)
}
 0x2f5   :  { %s764_s6 = scalar_lea.hbm %s934_s7, 256 }
 0x2f6   :  { %p765_p9 = scmp.ne.s32.totalorder %s934_s7, %s764_s6  ;;  %p768_p10 = scmp.lt.u32.totalorder %s764_s6, %s934_s7 }
 0x2f8   :  { %p770_p11 = pnand %p768_p10, %p765_p9 }
 0x2fa   :  { %773 = shalt.err (!%p770_p11)
}
 0x2fb   :  { %391 = dma.vmem_to_hbm [thread:$0]  %s386_s9, 256, %s934_s7, [#allocation4], %s784_s13, %s784_s13, %s785_s14  }
 0x2fc   :  { %780 = dma.done.wait [#allocation4], 256  }
 0x2fd   :  { %781 = vsyncadd [#allocation4], 4294967040 }
 0x2fe   :  { %395 = vsyncpa [#allocation3], 1 }
 0x2ff   :  { %396 = vsyncpa [#allocation6], 1 }
 0x300   :  { %397 = vsyncpa [#allocation9], 1 }
 0x301   :  { %398 = vsyncpa [#allocation4], 1 }

</bundles_post_ra>
